<compile_context>
chip_gen: v5e
topology: v5e:2x2
jax: 0.10.0
libtpu: 0.0.40
codegen_flags: <defaults>
</compile_context>

<pallas_src>
import math

import jax
import jax.numpy as jnp
from jax.experimental import pallas as pl
from jax.experimental.pallas import tpu as pltpu


def hybrid_embed_kernel(x_ref, wbb_ref, bbb_ref, wpj_ref, bpj_ref, o_ref):
    # Backbone 1x1 conv (lane-packed block-diagonal weight) on the MXU,
    # f32 accumulation; the kernel is memory-bound so MXU slack absorbs the
    # tiny-K contraction.
    feat = jnp.dot(x_ref[...], wbb_ref[...],
                   preferred_element_type=jnp.float32)
    # Bias + ReLU epilogue in f32 (VPU; v5e has no bf16 VPU path).
    feat = jnp.maximum(feat + bbb_ref[...], 0.0)
    # Projection 1x1 conv (patch_size=1): cast activations to the weight dtype
    # (bf16) for the MXU, accumulate in f32.
    out = jnp.dot(feat.astype(wpj_ref.dtype), wpj_ref[...],
                  preferred_element_type=jnp.float32)
    out = out + bpj_ref[...]
    o_ref[...] = out.astype(o_ref.dtype)


def hybrid_embed(x_nhwc, w_bb, b_bb, w_proj, b_proj, *, tile_pixels=4096):
    """x_nhwc: (B, H, W, C) channels-last  ->  (B, H*W, embed_dim)."""
    B, H, W, C = x_nhwc.shape
    F = w_bb.shape[1]
    E = w_proj.shape[1]
    n_rows = B * H * W

    # Lane-packing factor: smallest p with (p * E) % 128 == 0, so output stores
    # are unmasked / lane-dense.  For E already a multiple of 128, pack == 1.
    pack = 128 // math.gcd(E, 128)
    if pack > 8 or (n_rows % pack) != 0:
        pack = 1  # fallback: accept masked stores rather than blowing up weights

    n_prows = n_rows // pack
    Cp, Fp, Ep = C * pack, F * pack, E * pack

    # Exact lane-packed parameters (block-diagonal weights, tiled biases).
    wbb_p = jnp.kron(jnp.eye(pack, dtype=w_bb.dtype), w_bb)               # (Cp, Fp)
    wpj_p = jnp.kron(jnp.eye(pack, dtype=w_proj.dtype), w_proj)           # (Fp, Ep)
    bbb_p = jnp.tile(b_bb.reshape(1, F).astype(jnp.float32), (1, pack))   # (1, Fp)
    bpj_p = jnp.tile(b_proj.reshape(1, E).astype(jnp.float32), (1, pack))  # (1, Ep)

    # Free row-major view: (B, H, W, C) -> (n_rows/pack, pack*C).  No transpose.
    x_p = x_nhwc.reshape(n_prows, Cp)

    # Tile selection: big tiles (mem-bound), cdiv grid handles the tail, and
    # keep >= 2 grid steps when possible so v7x's 2 TensorCores are both used.
    tile_p = min(max(1, tile_pixels // pack), n_prows)
    if n_prows >= 16:
        tile_p = min(tile_p, pl.cdiv(n_prows, 2))
    if tile_p < n_prows:
        tile_p = max(8, (tile_p // 8) * 8)  # sublane-aligned when tiling
    grid = (pl.cdiv(n_prows, tile_p),)

    itemsize = jnp.dtype(x_nhwc.dtype).itemsize
    bytes_accessed = (
        x_p.size * jnp.dtype(x_p.dtype).itemsize
        + wbb_p.size * jnp.dtype(wbb_p.dtype).itemsize
        + wpj_p.size * jnp.dtype(wpj_p.dtype).itemsize
        + bbb_p.size * 4 + bpj_p.size * 4
        + n_prows * Ep * itemsize
    )

    out = pl.pallas_call(
        hybrid_embed_kernel,
        out_shape=jax.ShapeDtypeStruct((n_prows, Ep), x_nhwc.dtype),
        grid_spec=pltpu.PrefetchScalarGridSpec(
            num_scalar_prefetch=0,
            grid=grid,
            in_specs=[
                pl.BlockSpec((tile_p, Cp), lambda i: (i, 0)),  # packed pixel rows
                pl.BlockSpec((Cp, Fp), lambda i: (0, 0)),      # backbone weight (resident)
                pl.BlockSpec((1, Fp), lambda i: (0, 0)),       # backbone bias (f32)
                pl.BlockSpec((Fp, Ep), lambda i: (0, 0)),      # proj weight (resident)
                pl.BlockSpec((1, Ep), lambda i: (0, 0)),       # proj bias (f32)
            ],
            out_specs=pl.BlockSpec((tile_p, Ep), lambda i: (i, 0)),
        ),
        compiler_params=pltpu.CompilerParams(
            dimension_semantics=("parallel",),
            vmem_limit_bytes=48 * 1024 * 1024,
        ),
        cost_estimate=pl.CostEstimate(
            flops=2 * n_rows * (C * F + F * E),
            transcendentals=0,
            bytes_accessed=bytes_accessed,
        ),
    )(x_p, wbb_p, bbb_p, wpj_p, bpj_p)

    # Free view back to PyTorch's flatten(2).transpose(1, 2) layout.
    return out.reshape(B, H * W, E)


def reference(x_nhwc, w_bb, b_bb, w_proj, b_proj):
    B, H, W, C = x_nhwc.shape
    x_rows = x_nhwc.reshape(B * H * W, C).astype(jnp.float32)
    feat = jnp.maximum(x_rows @ w_bb.astype(jnp.float32) + b_bb, 0.0)
    out = feat @ w_proj.astype(jnp.float32) + b_proj
    return out.reshape(B, H * W, w_proj.shape[1])


if __name__ == "__main__":
    # Small shapes consistent with the module's forward:
    #   B=2, in_chans=4, img_size=16, feature_dim=8, embed_dim=32, patch_size=1
    B, H, W, C = 2, 16, 16, 4
    feature_dim, embed_dim = 8, 32

    key = jax.random.PRNGKey(0)
    kx, k1, k2, k3, k4 = jax.random.split(key, 5)

    # bf16 activations / weights (halves HBM traffic, MXU-native on v6e/v7x);
    # biases stay f32 for the f32 epilogue.
    x = jax.random.normal(kx, (B, H, W, C), dtype=jnp.float32).astype(jnp.bfloat16)
    # Backbone 1x1 conv: PyTorch weight (F, C, 1, 1) -> matmul form (C, F).
    w_bb = (jax.random.normal(k1, (C, feature_dim), dtype=jnp.float32) * 0.1
            ).astype(jnp.bfloat16)
    b_bb = jax.random.normal(k2, (1, feature_dim), dtype=jnp.float32) * 0.1
    # Proj conv (patch_size=1): PyTorch weight (E, F, 1, 1) -> matmul form (F, E).
    w_proj = (jax.random.normal(k3, (feature_dim, embed_dim), dtype=jnp.float32) * 0.1
              ).astype(jnp.bfloat16)
    b_proj = jax.random.normal(k4, (1, embed_dim), dtype=jnp.float32) * 0.1

    out = hybrid_embed(x, w_bb, b_bb, w_proj, b_proj)
    out = jax.block_until_ready(out)

    ref = reference(x, w_bb, b_bb, w_proj, b_proj)
    assert out.shape == (B, H * W, embed_dim), out.shape
    err = float(jnp.max(jnp.abs(out.astype(jnp.float32) - ref)))
    assert jnp.allclose(out.astype(jnp.float32), ref, atol=1e-2, rtol=5e-2), err

    print("KERNEL_OK")
</pallas_src>

<mosaic_0001>
module attributes {stable_mosaic.version = 11 : i64} {
  func.func @hybrid_embed_kernel(%arg0: i32, %arg1: memref<64x16xbf16, #tpu.memory_space<vmem>>, %arg2: memref<16x32xbf16, #tpu.memory_space<vmem>>, %arg3: memref<1x32xf32, #tpu.memory_space<vmem>>, %arg4: memref<32x128xbf16, #tpu.memory_space<vmem>>, %arg5: memref<1x128xf32, #tpu.memory_space<vmem>>, %arg6: memref<64x128xbf16, #tpu.memory_space<vmem>>) attributes {dimension_semantics = [#tpu.dimension_semantics<parallel>], iteration_bounds = array<i64: 2>, scalar_prefetch = 0 : i64, scratch_operands = 0 : i64, tpu.core_type = #tpu.core_type<tc>, window_params = [{transform_indices = @transform_0, window_bounds = array<i64: 64, 16>}, {pipeline_mode = #tpu.pipeline_mode<synchronous>, transform_indices = @transform_1, window_bounds = array<i64: 16, 32>}, {pipeline_mode = #tpu.pipeline_mode<synchronous>, transform_indices = @transform_2, window_bounds = array<i64: 1, 32>}, {pipeline_mode = #tpu.pipeline_mode<synchronous>, transform_indices = @transform_3, window_bounds = array<i64: 32, 128>}, {pipeline_mode = #tpu.pipeline_mode<synchronous>, transform_indices = @transform_4, window_bounds = array<i64: 1, 128>}, {transform_indices = @transform_5, window_bounds = array<i64: 64, 128>}]} {
    %c0 = arith.constant 0 : index
    %c0_0 = arith.constant 0 : index
    %0 = vector.load %arg1[%c0, %c0_0] : memref<64x16xbf16, #tpu.memory_space<vmem>>, vector<64x16xbf16>
    %c0_1 = arith.constant 0 : index
    %c0_2 = arith.constant 0 : index
    %1 = vector.load %arg2[%c0_1, %c0_2] : memref<16x32xbf16, #tpu.memory_space<vmem>>, vector<16x32xbf16>
    %cst = arith.constant dense<0.000000e+00> : vector<64x32xf32>
    %2 = tpu.matmul %0, %1, %cst {dimension_numbers = #tpu.dot_dimension_numbers<[1], [0], [0], [1], [0, 0, 1, 1], [], []>} : vector<64x16xbf16>, vector<16x32xbf16>, vector<64x32xf32> -> vector<64x32xf32>
    %c0_3 = arith.constant 0 : index
    %c0_4 = arith.constant 0 : index
    %3 = vector.load %arg3[%c0_3, %c0_4] : memref<1x32xf32, #tpu.memory_space<vmem>>, vector<1x32xf32>
    %4 = vector.broadcast %3 : vector<1x32xf32> to vector<64x32xf32>
    %5 = arith.addf %2, %4 : vector<64x32xf32>
    %cst_5 = arith.constant 0.000000e+00 : f32
    %6 = vector.broadcast %cst_5 : f32 to vector<64x32xf32>
    %7 = arith.maximumf %5, %6 : vector<64x32xf32>
    %8 = arith.truncf %7 : vector<64x32xf32> to vector<64x32xbf16>
    %c0_6 = arith.constant 0 : index
    %c0_7 = arith.constant 0 : index
    %9 = vector.load %arg4[%c0_6, %c0_7] : memref<32x128xbf16, #tpu.memory_space<vmem>>, vector<32x128xbf16>
    %cst_8 = arith.constant dense<0.000000e+00> : vector<64x128xf32>
    %10 = tpu.matmul %8, %9, %cst_8 {dimension_numbers = #tpu.dot_dimension_numbers<[1], [0], [0], [1], [0, 0, 1, 1], [], []>} : vector<64x32xbf16>, vector<32x128xbf16>, vector<64x128xf32> -> vector<64x128xf32>
    %c0_9 = arith.constant 0 : index
    %c0_10 = arith.constant 0 : index
    %11 = vector.load %arg5[%c0_9, %c0_10] : memref<1x128xf32, #tpu.memory_space<vmem>>, vector<1x128xf32>
    %12 = vector.broadcast %11 : vector<1x128xf32> to vector<64x128xf32>
    %13 = arith.addf %10, %12 : vector<64x128xf32>
    %14 = arith.truncf %13 : vector<64x128xf32> to vector<64x128xbf16>
    %c0_11 = arith.constant 0 : index
    %c0_12 = arith.constant 0 : index
    %15 = vector.load %arg6[%c0_11, %c0_12] : memref<64x128xbf16, #tpu.memory_space<vmem>>, vector<64x128xbf16>
    tpu.vector_store %arg6[%c0_11, %c0_12], %14 {strides = array<i32>} : memref<64x128xbf16, #tpu.memory_space<vmem>>, vector<64x128xbf16>,
    return
  }
  func.func @transform_0(%arg0: i32) -> (i32, i32) {
    %c0_i32 = arith.constant 0 : i32
    %c0_i32_0 = arith.constant 0 : i32
    return %arg0, %c0_i32 : i32, i32
  }
  func.func @transform_1(%arg0: i32) -> (i32, i32) {
    %c0_i32 = arith.constant 0 : i32
    %c0_i32_0 = arith.constant 0 : i32
    %c0_i32_1 = arith.constant 0 : i32
    return %c0_i32, %c0_i32_0 : i32, i32
  }
  func.func @transform_2(%arg0: i32) -> (i32, i32) {
    %c0_i32 = arith.constant 0 : i32
    %c0_i32_0 = arith.constant 0 : i32
    %c0_i32_1 = arith.constant 0 : i32
    return %c0_i32, %c0_i32_0 : i32, i32
  }
  func.func @transform_3(%arg0: i32) -> (i32, i32) {
    %c0_i32 = arith.constant 0 : i32
    %c0_i32_0 = arith.constant 0 : i32
    %c0_i32_1 = arith.constant 0 : i32
    return %c0_i32, %c0_i32_0 : i32, i32
  }
  func.func @transform_4(%arg0: i32) -> (i32, i32) {
    %c0_i32 = arith.constant 0 : i32
    %c0_i32_0 = arith.constant 0 : i32
    %c0_i32_1 = arith.constant 0 : i32
    return %c0_i32, %c0_i32_0 : i32, i32
  }
  func.func @transform_5(%arg0: i32) -> (i32, i32) {
    %c0_i32 = arith.constant 0 : i32
    %c0_i32_0 = arith.constant 0 : i32
    return %arg0, %c0_i32 : i32, i32
  }
}

</mosaic_0001>

<bundles_post_ra>
// kernel: tpu_custom_call.1
= control target key start
LH: loop header
LB: loop body
LE: loop exit
PB: predicated region body
PF: predicated region fallthrough
CT: control target
= control target key end

     0   :  { %10 = vsyncpa [#allocation3], 0  ;;  %s805_s0 = inlined_call_operand.vmem [shape: bf16[128,16], index: 0, kind: input, shape index: {}]   ;;  %s806_s1 = inlined_call_operand.vmem [shape: bf16[16,32], index: 1, kind: input, shape index: {}]   ;;  %s807_s2 = inlined_call_operand.vmem [shape: f32[1,32], index: 2, kind: input, shape index: {}]   ;;  %s808_s3 = inlined_call_operand.vmem [shape: bf16[32,128], index: 3, kind: input, shape index: {}]   ;;  %s809_s4 = inlined_call_operand.vmem [shape: f32[1,128], index: 4, kind: input, shape index: {}]   ;;  %s810_s5 = inlined_call_operand.hbm [shape: bf16[128,128], index: 5, kind: output, shape index: {}]  }
   0x1   :  { %12 = vsyncpa [#allocation3 + $0x1], 0  ;;  %s698_s18 = smov 0   ;;  %s700_s19 = smov 0  }
   0x2   :  { %s702_s20 = smov 0   ;;  %s704_s21 = smov 0  }
   0x3 LB: > { %s719_s22 = sadd.s32 4294967295, %s664_s21   ;;  %s477_s23 = sadd.s32 4294967294, %s664_s21   ;;  %s664_s21 = sphi %s704_s21, %s816_s21   ;;  %s660_s20 = sphi %s702_s20, %s815_s20   ;;  %s656_s19 = sphi %s700_s19, %s814_s19   ;;  %s652_s18 = sphi %s698_s18, %s813_s18  }
   0x4   : > { %s723_s24 = sadd.s32 1, %s664_s21   ;;  %s135_s25 = sadd.s32 1, %s660_s20 }
   0x5   : > { %s132_s26 = ssub.s32 %s664_s21, %s723_s24  ;;  %p145_p0 = scmp.ne.s32.totalorder %s660_s20, %s656_s19 }
   0x6   : > { %p133_p1 = scmp.eq.s32.totalorder %s132_s26, 0  ;;  %p146_p2 = scmp.eq.s32.totalorder %s719_s22, 1 }
   0x7   : > { %p151_p3 = scmp.ne.s32.totalorder %s656_s19, %s652_s18  ;;  %p152_p4 = scmp.eq.s32.totalorder %s477_s23, 1 }
   0x8   : > { %s734_s27 = scalar_select %p133_p1, %s660_s20, %s135_s25  }
   0x9   : > { %p736_p5 = por %p146_p2, %p145_p0  ;;  %p740_p6 = por %p152_p4, %p151_p3 }
   0xa   : > { %p480_p7 = scmp.ge.s32.totalorder %s664_s21, 1  ;;  %p191_p8 = scmp.lt.s32.totalorder %s664_s21, 3 }
   0xc   : > { %p192_p9 = pnand %p480_p7, %p191_p8 }
   0xd   : > { %s482_s7 = sshll.u32 (!%p192_p9), %s719_s22, 3  ;;  %s216_s23 = sand.u32 (!%p192_p9), 1, %s656_s19  }
   0xe   : > { %195 = sbr.rel (%p192_p9) target bundleno = 349 (0x15d), region = 40  ;;  %p220_p10 = scmp.lt.s32.totalorder (!%p192_p9), %s482_s7, 15 }
   0xf   : > { %s481_s30 = sshll.u32 (!%p192_p9), %s216_s23, 5  ;;  %s400_s13 = scalar_lea.sflag (!%p192_p9), [#allocation3], %s216_s23 }
  0x10   : > { %s218_s6 = scalar_lea.vmem (!%p192_p9), [#allocation2], %s481_s30  ;;  %s622_s17 = scalar_lea.hbm (!%p192_p9), %s810_s5, 64 }
  0x13   : > { %v529_v0 = vld [vmem:[%s806_s1] sm:$0xff]  ;;  %s818_s7 = smov (!%p220_p10, %s482_s7), 15  ;;  %vm267_vm0 = vcmask 130048   ;;  %v531_v5 = vld [vmem:[%s808_s3 + $0x8] sm:$0xff]  ;;  %vm341_vm1 = vcmask 261120  }
  0x14   : > { %287 = vmatpush.bf16.msra.mxu0 %v529_v0  ;;  %556 = vmatpush.bf16.msra.mxu3 %v529_v0  ;;  %s483_s8 = sshll.u32 %s818_s7, 2  ;;  %v530_v6 = vld [vmem:[%s808_s3] sm:$0xff]  ;;  %s532_s7 = sshll.u32 %s719_s22, 5 }
  0x15   : > { %s223_s11 = scalar_lea.vmem %s805_s0, %s483_s8  ;;  %360 = vmatpush.bf16.msra.mxu1 %v531_v5  ;;  %557 = vmatpush.bf16.msra.mxu2 %v531_v5  ;;  %v600_v8 = vld [vmem:[%s807_s2] ss:$0 sm:$0xff]  ;;  %s411_s10 = scalar_lea.hbm %s810_s5, %s532_s7 }
  0x16   : > { %v525_v1 = vld [vmem:[%s223_s11] sm:$0xff]  ;;  %v526_v2 = vld [vmem:[%s223_s11 + $0x8] sm:$0xff]  ;;  %v527_v3 = vld [vmem:[%s223_s11 + $0x10] sm:$0xff]  ;;  %s414_s12 = sshll.u32 %s411_s10, 4  ;;  %s415_s12 = int_to_ptr.hbm [resolvable:$true] %s414_s12 }
  0x17   : > { %504 = vmatmul.msk.bf16.vlgmr.msra.gmra.mxu0 %vm267_vm0, %v525_v1  ;;  %505 = vmatmul.msk.bf16.vlgmr.msra.gmra.mxu3 %vm267_vm0, %v526_v2  ;;  %v528_v4 = vld [vmem:[%s223_s11 + $0x18] sm:$0xff]  ;;  %v601_v37 = vld [vmem:[%s809_s4] ss:$0 sm:$0xff]  ;;  %s412_s11 = sshll.u32 %s218_s6, 4  ;;  %s616_s14 = sshra.s32 %s415_s12, 4  ;;  %s413_s11 = int_to_ptr.vmem [resolvable:$true] %s412_s11  ;;  %s617_s14 = int_to_ptr.hbm [resolvable:$true] %s616_s14 }
  0x18   : > { %s618_s15 = scalar_lea.hbm %s617_s14, 32  ;;  %p623_p0 = scmp.lt.s32.totalorder %s617_s14, %s810_s5 }
  0x19   : > { %361 = vmatpush.bf16.msra.mxu1 %v530_v6  ;;  %558 = vmatpush.bf16.msra.mxu2 %v530_v6  ;;  %p619_p11 = scmp.ne.s32.totalorder %s617_s14, %s618_s15  ;;  %p624_p1 = scmp.lt.s32.totalorder %s622_s17, %s618_s15 }
  0x1b   : > { %p620_p12 = pnand %p619_p11, %p736_p5  ;;  %p625_p2 = por %p624_p1, %p623_p0 }
  0x1d   : > { %p621_p13 = pneg %p620_p12 }
  0x1f   : > { %p626_p3 = pnand %p625_p2, %p621_p13 }
  0x27   : > { %506 = vmatmul.msk.bf16.gmra.mxu3 %vm267_vm0, %v527_v3 }
  0x37   : > { %507 = vmatmul.msk.bf16.gmra.mxu3 %vm267_vm0, %v528_v4 }
  0x94   : > { %v289_v7 = vpop.f32.mrf.mxu0 }
  0x95   : > { %v290_v9 = vadd.f32 %v600_v8, %v289_v7 }
  0x97   : > { %v309_v12 = vmax.f32 %v290_v9, 0.0 }
  0x9a   : > { %v294_v10 = vpop.f32.mrf.mxu3 }
  0x9b   : > { %v295_v19 = vadd.f32 %v600_v8, %v294_v10 }
  0x9c   : > { %v291_v11 = vpop.f32.mrf.mxu0 }
  0x9d   : > { %v292_v13 = vadd.f32 %v600_v8, %v291_v11  ;;  %v311_v21 = vmax.f32 %v295_v19, 0.0 }
  0x9f   : > { %v310_v14 = vmax.f32 %v292_v13, 0.0 }
  0xa1   : > { %v317_v15 = vpack.c.bf16 %v310_v14, %v309_v12 }
  0xa2   : > { %v296_v16 = vpop.f32.mrf.mxu3 }
  0xa3   : > { %516 = vmatmul.msk.bf16.vlgmr.msra.gmra.mxu1 %vm341_vm1, %v317_v15  ;;  %v297_v17 = vadd.f32 %v600_v8, %v296_v16 }
  0xa5   : > { %v312_v20 = vmax.f32 %v297_v17, 0.0 }
  0xa7   : > { %v318_v22 = vpack.c.bf16 %v312_v20, %v311_v21 }
  0xaa   : > { %v299_v18 = vpop.f32.mrf.mxu3 }
  0xab   : > { %v300_v23 = vadd.f32 %v600_v8, %v299_v18 }
  0xad   : > { %v313_v26 = vmax.f32 %v300_v23, 0.0 }
  0xb2   : > { %v301_v24 = vpop.f32.mrf.mxu3 }
  0xb3   : > { %v302_v25 = vadd.f32 %v600_v8, %v301_v24  ;;  %517 = vmatmul.msk.bf16.gmra.mxu1 %vm341_vm1, %v318_v22 }
  0xb5   : > { %v314_v27 = vmax.f32 %v302_v25, 0.0 }
  0xb7   : > { %v319_v28 = vpack.c.bf16 %v314_v27, %v313_v26 }
  0xb9   : > { %518 = vmatmul.msk.bf16.vlgmr.msra.gmra.mxu2 %vm341_vm1, %v319_v28 }
  0xba   : > { %v304_v29 = vpop.f32.mrf.mxu3 }
  0xbb   : > { %v305_v30 = vadd.f32 %v600_v8, %v304_v29 }
  0xbd   : > { %v315_v33 = vmax.f32 %v305_v30, 0.0 }
  0xc2   : > { %v306_v31 = vpop.f32.mrf.mxu3 }
  0xc3   : > { %v307_v32 = vadd.f32 %v600_v8, %v306_v31 }
  0xc5   : > { %v316_v34 = vmax.f32 %v307_v32, 0.0 }
  0xc7   : > { %v320_v35 = vpack.c.bf16 %v316_v34, %v315_v33 }
  0xc9   : > { %519 = vmatmul.msk.bf16.gmra.mxu2 %vm341_vm1, %v320_v35 }
 0x120   : > { %v363_v36 = vpop.f32.mrf.mxu1 }
 0x121   : > { %v364_v38 = vadd.f32 %v601_v37, %v363_v36 }
 0x128   : > { %v365_v39 = vpop.f32.mrf.mxu1 }
 0x129   : > { %v366_v40 = vadd.f32 %v601_v37, %v365_v39 }
 0x12b   : > { %v536_v41 = vpack.c.bf16 %v366_v40, %v364_v38 }
 0x12d   : > { %537 = vst [vmem:[%s218_s6] sm:$0xff] %v536_v41  }
 0x130   : > { %v368_v42 = vpop.f32.mrf.mxu1 }
 0x131   : > { %v369_v44 = vadd.f32 %v601_v37, %v368_v42 }
 0x138   : > { %v370_v43 = vpop.f32.mrf.mxu1 }
 0x139   : > { %v371_v45 = vadd.f32 %v601_v37, %v370_v43 }
 0x13b   : > { %v541_v46 = vpack.c.bf16 %v371_v45, %v369_v44 }
 0x13c   : > { %v373_v47 = vpop.f32.mrf.mxu2 }
 0x13d   : > { %553 = vst [vmem:[%s218_s6 + $0x8] sm:$0xff] %v541_v46   ;;  %v374_v49 = vadd.f32 %v601_v37, %v373_v47 }
 0x144   : > { %v375_v48 = vpop.f32.mrf.mxu2 }
 0x145   : > { %v376_v50 = vadd.f32 %v601_v37, %v375_v48 }
 0x147   : > { %v546_v51 = vpack.c.bf16 %v376_v50, %v374_v49 }
 0x149   : > { %554 = vst [vmem:[%s218_s6 + $0x10] sm:$0xff] %v546_v51  }
 0x14c   : > { %v378_v52 = vpop.f32.mrf.mxu2 }
 0x14d   : > { %v379_v54 = vadd.f32 %v601_v37, %v378_v52 }
 0x154   : > { %v380_v53 = vpop.f32.mrf.mxu2 }
 0x155   : > { %v381_v55 = vadd.f32 %v601_v37, %v380_v53 }
 0x157   : > { %v551_v56 = vpack.c.bf16 %v381_v55, %v379_v54 }
 0x159   : > { %555 = vst [vmem:[%s218_s6 + $0x18] sm:$0xff] %v551_v56  }
 0x15a   : > { %629 = shalt.err (!%p626_p3)
}
 0x15b   : > { %s666_s23 = smov 64   ;;  %s667_s30 = smov 4  }
 0x15c   : > { %559 = dma.vmem_to_hbm [thread:$0]  (%p736_p5), %s413_s11, 512, %s415_s12, %s400_s13, %s666_s23, %s666_s23, %s667_s30  }
 0x15d PF: > { %p565_p4 = scmp.ge.s32.totalorder %s664_s21, 2  ;;  %s429_s6 = sand.u32 1, %s652_s18  }
 0x15e   : > { %s430_s7 = scalar_lea.sflag [#allocation3], %s429_s6 }
 0x15f   : > { %p562_p7 = pnand %p565_p4, %p740_p6 }
 0x161   : > { %p563_p8 = pneg %p562_p7 }
 0x163   : > { %647 = dma.done.wait (%p563_p8), %s430_s7, 512  }
 0x164   : > { %649 = vsyncadd (%p563_p8), %s430_s7, 4294966784  ;;  %p15_p9 = scmp.ge.s32.totalorder %s723_s24, 4   ;;  %s813_s18 = smov %s656_s19 }
 0x165   : > { %s814_s19 = smov %s660_s20  ;;  %s815_s20 = smov %s734_s27 }
 0x166   : > { %s816_s21 = smov %s723_s24  ;;  %17 = sbr.rel (!%p15_p9) target bundleno = 3 (0x3), region = 75 }
 0x16b   :  { %436 = vsyncpa [#allocation3], 1 }
 0x16c   :  { %438 = vsyncpa [#allocation3 + $0x1], 1 }

</bundles_post_ra>
